<compile_context>
chip_gen: v6e
topology: v6e:2x2x1
jax: 0.10.0
libtpu: 0.0.40
codegen_flags: <defaults>
</compile_context>

<pallas_src>
import functools

import jax
import jax.numpy as jnp
import numpy as np
from jax import lax
from jax.experimental import pallas as pl
from jax.experimental.pallas import tpu as pltpu


def _compiler_params(semantics, est_bytes):
    """dimension_semantics + an explicit scoped-VMEM limit sized from the blocks."""
    limit = int(min(max(2 * est_bytes + (4 << 20), 32 << 20), 48 << 20))
    return pltpu.CompilerParams(dimension_semantics=semantics,
                                vmem_limit_bytes=limit)


def _gate_topk_kernel(x_ref, wt_ref, b_ref, ts_ref, sel_ref):
    """Gate linear (MXU) + sigmoid (EUP) + iterative top-k for one token tile."""
    K, TM = ts_ref.shape
    E = wt_ref.shape[1]

    logits = jnp.dot(x_ref[...], wt_ref[...], preferred_element_type=jnp.float32)
    logits = logits + b_ref[...].astype(jnp.float32)            # (TM, E)

    # Work in the (E, TM) frame: for E << 128 this packs ~128/E x more elements
    # per vreg for the sigmoid and the selection compares, and every per-k
    # result comes out as a lane-dense (1, TM) row (unmasked store into (K, TM)).
    lt = logits.T                                               # small (TM,E) transpose
    scores = jax.nn.sigmoid(lt)                                 # f32, (E, TM)
    if ts_ref.dtype != jnp.float32:
        # Faithful torch cast chain (sigmoid -> x.dtype) so tie-breaking on the
        # selection path matches the reference; the up-cast back to f32 is exact.
        scores = scores.astype(ts_ref.dtype).astype(jnp.float32)

    expert_ids = lax.broadcasted_iota(jnp.int32, (E, TM), 0)
    work = scores
    vals, idxs = [], []
    for _ in range(K):                                          # K static & small
        m = jnp.max(work, axis=0, keepdims=True)                # (1, TM)
        # lowest expert index attaining the max — torch / lax.top_k tie-break
        idx = jnp.min(jnp.where(work == m, expert_ids, E), axis=0, keepdims=True)
        vals.append(m)
        idxs.append(idx)
        work = jnp.where(expert_ids == idx, -jnp.inf, work)
    ts_ref[...] = jnp.concatenate(vals, axis=0).astype(ts_ref.dtype)   # (K, TM)
    sel_ref[...] = jnp.concatenate(idxs, axis=0)                       # (K, TM) int32


def _hist_sort_kernel(e_ref, s_ref, ts_ref, ti_ref, cnt_ref, acc_ref, *,
                      top_k, n_valid, tile, out_tile):
    """Histogram + stable counting sort of flat (token*K) expert assignments.

    e_ref/s_ref: (1, NKp) lane-dense rows in token-major flat order, padded past
      `n_valid` with expert id == E (sentinel) / score 0.
    ts_ref/ti_ref: (1, NKp) expert-sorted scores / token indices.
    cnt_ref: (E, 1) per-expert token counts.  acc_ref: (2, NKp) f32 scratch.
    """
    NKp = e_ref.shape[1]
    E = cnt_ref.shape[0]
    n_tiles = NKp // tile
    n_out_tiles = NKp // out_tile

    e_row = e_ref[...]                                          # (1, NKp) int32
    s_row = s_ref[...].astype(jnp.float32)                      # (1, NKp)

    # Static helpers, hoisted out of the tile loops.
    su_p = (lax.broadcasted_iota(jnp.int32, (tile, tile), 0) <
            lax.broadcasted_iota(jnp.int32, (tile, tile), 1)).astype(jnp.float32)
    sub_e = lax.broadcasted_iota(jnp.int32, (E, tile), 0)
    pos = lax.broadcasted_iota(jnp.int32, (1, tile), 1)
    out_ids = lax.broadcasted_iota(jnp.int32, (tile, out_tile), 1)

    # Pass 1: running per-expert histogram (carried) and within-expert exclusive
    # rank per flat position; all arrays are (E, tile)/(1, tile) lane-dense and
    # the prefix sum is a (E,tile)x(tile,tile) MXU matmul per tile.
    # TODO(synk): switch these static Python tile loops to pl.loop/lax.fori_loop
    # once NKp/tile grows beyond a few dozen tiles (unroll size).
    carried = jnp.zeros((E, 1), jnp.float32)
    rank_within = []
    for b in range(n_tiles):
        e_t = e_row[:, b * tile:(b + 1) * tile]                 # (1, tile)
        oh = (sub_e == e_t).astype(jnp.float32)                 # (E, tile)
        prefx = jnp.dot(oh, su_p, preferred_element_type=jnp.float32)
        rank_within.append(jnp.sum(oh * (prefx + carried), axis=0, keepdims=True))
        carried = carried + jnp.sum(oh, axis=1, keepdims=True)
    counts = carried                                            # (E, 1) totals
    cnt_ref[...] = counts.astype(jnp.int32)

    # Exclusive prefix over experts: g[e] = sum_{e' < e} counts[e'].
    su_e = (lax.broadcasted_iota(jnp.int32, (E, E), 1) <
            lax.broadcasted_iota(jnp.int32, (E, E), 0)).astype(jnp.float32)
    g = jnp.dot(su_e, counts, preferred_element_type=jnp.float32)   # (E, 1)

    # Pass 2: final rank = g[e] + rank_within; scatter [score, token_idx] into
    # sorted order with one MXU matmul per (input tile, output tile) pair.
    acc_ref[...] = jnp.zeros_like(acc_ref)
    for b in range(n_tiles):
        e_t = e_row[:, b * tile:(b + 1) * tile]
        s_t = s_row[:, b * tile:(b + 1) * tile]
        oh = (sub_e == e_t).astype(jnp.float32)
        rank = rank_within[b] + jnp.sum(oh * g, axis=0, keepdims=True)   # (1, tile)
        gpos = pos + b * tile
        valid = gpos < n_valid
        tok = (gpos // top_k).astype(jnp.float32)
        packed = jnp.concatenate([jnp.where(valid, s_t, 0.0),
                                  jnp.where(valid, tok, 0.0)], axis=0)   # (2, tile)
        rank_col = jnp.transpose(rank).astype(jnp.int32)                 # (tile, 1)
        for o in range(n_out_tiles):
            perm = (rank_col == (out_ids + o * out_tile)).astype(jnp.float32)
            acc_ref[:, o * out_tile:(o + 1) * out_tile] += jnp.dot(
                packed, perm, preferred_element_type=jnp.float32)        # (2, out_tile)

    ts_ref[...] = acc_ref[0:1, :].astype(ts_ref.dtype)
    ti_ref[...] = acc_ref[1:2, :].astype(jnp.int32)


def token_choice_topk_router(x, gate_w, gate_b, *, num_experts, experts_per_token):
    """x: (n_tokens, dim); gate_w: (num_experts, dim); gate_b: (num_experts,)."""
    N, D = x.shape
    E = num_experts
    K = experts_per_token
    NK = N * K
    assert NK < (1 << 24)  # counting-sort ranks/counts accumulate exactly in f32

    # ---- kernel 1: gate + sigmoid + top-k, pipelined over token tiles --------
    TM = N if N <= 256 else 256        # 256 is (8,128)-aligned; partial tail tile OK
    n_tiles = pl.cdiv(N, TM)
    est1 = (TM * D * x.dtype.itemsize          # activation tile
            + D * max(E, 128) * 4              # resident (lane-padded) gate weight
            + TM * max(E, 128) * 4             # logits temporaries
            + 4 * max(K, 8) * TM * 4)          # outputs
    ts_kn, sel_kn = pl.pallas_call(
        _gate_topk_kernel,
        grid=(n_tiles,),
        in_specs=[
            pl.BlockSpec((TM, D), lambda i: (i, 0)),
            pl.BlockSpec((D, E), lambda i: (0, 0)),     # stays resident across steps
            pl.BlockSpec((1, E), lambda i: (0, 0)),
        ],
        out_specs=(
            pl.BlockSpec((K, TM), lambda i: (0, i)),    # lane-dense along tokens
            pl.BlockSpec((K, TM), lambda i: (0, i)),
        ),
        out_shape=(
            jax.ShapeDtypeStruct((K, N), x.dtype),
            jax.ShapeDtypeStruct((K, N), jnp.int32),
        ),
        compiler_params=_compiler_params(("parallel",), est1),
    )(x, gate_w.T, gate_b.reshape(1, E))

    # glue: token-major flattening (== torch .view(-1)) + pad to the sort tile
    flat_e = jnp.transpose(sel_kn).reshape(1, NK)
    flat_s = jnp.transpose(ts_kn).reshape(1, NK)
    T_SORT = NK if NK <= 512 else 512
    NKp = pl.cdiv(NK, T_SORT) * T_SORT
    if NKp != NK:
        flat_e = jnp.pad(flat_e, ((0, 0), (0, NKp - NK)), constant_values=E)
        flat_s = jnp.pad(flat_s, ((0, 0), (0, NKp - NK)))
    T_OUT = T_SORT

    est2 = (6 * NKp * 4 + T_SORT * T_SORT * 4
            + 3 * max(E, 8) * T_SORT * 4 + T_SORT * T_OUT * 4)
    ts, ti, cnt = pl.pallas_call(
        functools.partial(_hist_sort_kernel, top_k=K, n_valid=NK,
                          tile=T_SORT, out_tile=T_OUT),
        grid=(1,),
        in_specs=[
            pl.BlockSpec((1, NKp), lambda i: (0, 0)),
            pl.BlockSpec((1, NKp), lambda i: (0, 0)),
        ],
        out_specs=(
            pl.BlockSpec((1, NKp), lambda i: (0, 0)),
            pl.BlockSpec((1, NKp), lambda i: (0, 0)),
            pl.BlockSpec((E, 1), lambda i: (0, 0)),
        ),
        out_shape=(
            jax.ShapeDtypeStruct((1, NKp), x.dtype),    # expert-sorted top scores
            jax.ShapeDtypeStruct((1, NKp), jnp.int32),  # token indices (int32, not int64)
            jax.ShapeDtypeStruct((E, 1), jnp.int32),    # num_tokens_per_expert (int32)
        ),
        scratch_shapes=[pltpu.VMEM((2, NKp), jnp.float32)],
        compiler_params=_compiler_params(("arbitrary",), est2),
    )(flat_e, flat_s)

    return ts[0, :NK], ti[0, :NK], cnt.reshape(E)


if __name__ == "__main__":
    dim, num_experts, top_k = 32, 8, 2
    bs, slen = 2, 8
    n_tokens = bs * slen

    key = jax.random.PRNGKey(0)
    kx, kw, kb = jax.random.split(key, 3)
    x = jax.random.normal(kx, (n_tokens, dim), dtype=jnp.float32)
    gate_w = jax.random.normal(kw, (num_experts, dim), dtype=jnp.float32) * 0.05
    gate_b = jax.random.normal(kb, (num_experts,), dtype=jnp.float32) * 0.01

    top_scores, token_indices, num_tokens_per_expert = token_choice_topk_router(
        x, gate_w, gate_b, num_experts=num_experts, experts_per_token=top_k)
    jax.block_until_ready((top_scores, token_indices, num_tokens_per_expert))

    # pure-JAX reference for sanity
    scores_ref = jax.nn.sigmoid(
        jnp.dot(x, gate_w.T, precision=jax.lax.Precision.HIGHEST) + gate_b)
    tv, sel_ref = jax.lax.top_k(scores_ref, top_k)
    order = jnp.argsort(sel_ref.reshape(-1), stable=True)
    ref_scores = tv.reshape(-1)[order]
    ref_tok = order // top_k
    ref_cnt = jnp.sum(sel_ref.reshape(-1)[:, None] == jnp.arange(num_experts)[None, :],
                      axis=0)

    np.testing.assert_array_equal(np.asarray(token_indices), np.asarray(ref_tok))
    np.testing.assert_array_equal(np.asarray(num_tokens_per_expert), np.asarray(ref_cnt))
    np.testing.assert_allclose(np.asarray(top_scores), np.asarray(ref_scores),
                               rtol=2e-2, atol=2e-2)

    print("KERNEL_OK")
</pallas_src>

<mosaic_0001>
module attributes {stable_mosaic.version = 11 : i64} {
  func.func @_gate_topk_kernel(%arg0: i32, %arg1: memref<16x32xf32, #tpu.memory_space<vmem>>, %arg2: memref<32x8xf32, #tpu.memory_space<vmem>>, %arg3: memref<1x8xf32, #tpu.memory_space<vmem>>, %arg4: memref<2x16xf32, #tpu.memory_space<vmem>>, %arg5: memref<2x16xi32, #tpu.memory_space<vmem>>) attributes {dimension_semantics = [#tpu.dimension_semantics<parallel>], iteration_bounds = array<i64: 1>, scalar_prefetch = 0 : i64, scratch_operands = 0 : i64, tpu.core_type = #tpu.core_type<tc>, window_params = [{transform_indices = @transform_0, window_bounds = array<i64: 16, 32>}, {pipeline_mode = #tpu.pipeline_mode<synchronous>, transform_indices = @transform_1, window_bounds = array<i64: 32, 8>}, {pipeline_mode = #tpu.pipeline_mode<synchronous>, transform_indices = @transform_2, window_bounds = array<i64: 1, 8>}, {transform_indices = @transform_3, window_bounds = array<i64: 2, 16>}, {transform_indices = @transform_4, window_bounds = array<i64: 2, 16>}]} {
    %c0 = arith.constant 0 : index
    %c0_0 = arith.constant 0 : index
    %0 = vector.load %arg1[%c0, %c0_0] : memref<16x32xf32, #tpu.memory_space<vmem>>, vector<16x32xf32>
    %c0_1 = arith.constant 0 : index
    %c0_2 = arith.constant 0 : index
    %1 = vector.load %arg2[%c0_1, %c0_2] : memref<32x8xf32, #tpu.memory_space<vmem>>, vector<32x8xf32>
    %cst = arith.constant dense<0.000000e+00> : vector<16x8xf32>
    %2 = tpu.matmul %0, %1, %cst {dimension_numbers = #tpu.dot_dimension_numbers<[1], [0], [0], [1], [0, 0, 1, 1], [], []>} : vector<16x32xf32>, vector<32x8xf32>, vector<16x8xf32> -> vector<16x8xf32>
    %c0_3 = arith.constant 0 : index
    %c0_4 = arith.constant 0 : index
    %3 = vector.load %arg3[%c0_3, %c0_4] : memref<1x8xf32, #tpu.memory_space<vmem>>, vector<1x8xf32>
    %4 = vector.broadcast %3 : vector<1x8xf32> to vector<16x8xf32>
    %5 = arith.addf %2, %4 : vector<16x8xf32>
    %6 = tpu.transpose %5, [1, 0] : vector<16x8xf32> -> vector<8x16xf32>
    %7 = arith.negf %6 : vector<8x16xf32>
    %8 = math.exp %7 : vector<8x16xf32>
    %cst_5 = arith.constant 1.000000e+00 : f32
    %9 = vector.broadcast %cst_5 : f32 to vector<8x16xf32>
    %10 = arith.addf %9, %8 : vector<8x16xf32>
    %11 = arith.divf %9, %10 : vector<8x16xf32>
    %12 = tpu.iota {dimensions = array<i32: 0>} : vector<8x16xi32>
    %cst_6 = arith.constant dense<0xFF800000> : vector<16xf32>
    %13 = vector.multi_reduction <maximumf>, %11, %cst_6 [0] : vector<8x16xf32> to vector<16xf32>
    %14 = vector.shape_cast %13 : vector<16xf32> to vector<1x16xf32>
    %15 = vector.broadcast %14 : vector<1x16xf32> to vector<8x16xf32>
    %16 = arith.cmpf oeq, %11, %15 : vector<8x16xf32>
    %c8_i32 = arith.constant 8 : i32
    %17 = vector.broadcast %c8_i32 : i32 to vector<8x16xi32>
    %18 = arith.select %16, %12, %17 : vector<8x16xi1>, vector<8x16xi32>
    %cst_7 = arith.constant dense<2147483647> : vector<16xi32>
    %19 = vector.multi_reduction <minsi>, %18, %cst_7 [0] : vector<8x16xi32> to vector<16xi32>
    %20 = vector.shape_cast %19 : vector<16xi32> to vector<1x16xi32>
    %21 = vector.broadcast %20 : vector<1x16xi32> to vector<8x16xi32>
    %22 = arith.cmpi eq, %12, %21 : vector<8x16xi32>
    %cst_8 = arith.constant 0xFF800000 : f32
    %23 = vector.broadcast %cst_8 : f32 to vector<8x16xf32>
    %24 = arith.select %22, %23, %11 : vector<8x16xi1>, vector<8x16xf32>
    %cst_9 = arith.constant dense<0xFF800000> : vector<16xf32>
    %25 = vector.multi_reduction <maximumf>, %24, %cst_9 [0] : vector<8x16xf32> to vector<16xf32>
    %26 = vector.shape_cast %25 : vector<16xf32> to vector<1x16xf32>
    %27 = vector.broadcast %26 : vector<1x16xf32> to vector<8x16xf32>
    %28 = arith.cmpf oeq, %24, %27 : vector<8x16xf32>
    %c8_i32_10 = arith.constant 8 : i32
    %29 = vector.broadcast %c8_i32_10 : i32 to vector<8x16xi32>
    %30 = arith.select %28, %12, %29 : vector<8x16xi1>, vector<8x16xi32>
    %cst_11 = arith.constant dense<2147483647> : vector<16xi32>
    %31 = vector.multi_reduction <minsi>, %30, %cst_11 [0] : vector<8x16xi32> to vector<16xi32>
    %32 = vector.shape_cast %31 : vector<16xi32> to vector<1x16xi32>
    %33 = tpu.concatenate %14, %26 in 0 : vector<1x16xf32>, vector<1x16xf32> -> vector<2x16xf32>
    %c0_12 = arith.constant 0 : index
    %c0_13 = arith.constant 0 : index
    %34 = vector.load %arg4[%c0_12, %c0_13] : memref<2x16xf32, #tpu.memory_space<vmem>>, vector<2x16xf32>
    tpu.vector_store %arg4[%c0_12, %c0_13], %33 {strides = array<i32>} : memref<2x16xf32, #tpu.memory_space<vmem>>, vector<2x16xf32>,
    %35 = tpu.concatenate %20, %32 in 0 : vector<1x16xi32>, vector<1x16xi32> -> vector<2x16xi32>
    %c0_14 = arith.constant 0 : index
    %c0_15 = arith.constant 0 : index
    %36 = vector.load %arg5[%c0_14, %c0_15] : memref<2x16xi32, #tpu.memory_space<vmem>>, vector<2x16xi32>
    tpu.vector_store %arg5[%c0_14, %c0_15], %35 {strides = array<i32>} : memref<2x16xi32, #tpu.memory_space<vmem>>, vector<2x16xi32>,
    return
  }
  func.func @transform_0(%arg0: i32) -> (i32, i32) {
    %c0_i32 = arith.constant 0 : i32
    %c0_i32_0 = arith.constant 0 : i32
    return %arg0, %c0_i32 : i32, i32
  }
  func.func @transform_1(%arg0: i32) -> (i32, i32) {
    %c0_i32 = arith.constant 0 : i32
    %c0_i32_0 = arith.constant 0 : i32
    %c0_i32_1 = arith.constant 0 : i32
    return %c0_i32, %c0_i32_0 : i32, i32
  }
  func.func @transform_2(%arg0: i32) -> (i32, i32) {
    %c0_i32 = arith.constant 0 : i32
    %c0_i32_0 = arith.constant 0 : i32
    %c0_i32_1 = arith.constant 0 : i32
    return %c0_i32, %c0_i32_0 : i32, i32
  }
  func.func @transform_3(%arg0: i32) -> (i32, i32) {
    %c0_i32 = arith.constant 0 : i32
    %c0_i32_0 = arith.constant 0 : i32
    return %c0_i32, %arg0 : i32, i32
  }
  func.func @transform_4(%arg0: i32) -> (i32, i32) {
    %c0_i32 = arith.constant 0 : i32
    %c0_i32_0 = arith.constant 0 : i32
    return %c0_i32, %arg0 : i32, i32
  }
}

</mosaic_0001>

<bundles_post_ra>
// kernel: tpu_custom_call.1
= control target key start
LH: loop header
LB: loop body
LE: loop exit
PB: predicated region body
PF: predicated region fallthrough
CT: control target
= control target key end

     0   :  { %10 = vsyncpa [#allocation3], 0  ;;  %vm31_vm0 = vcmask 261120   ;;  %s362_s0 = inlined_call_operand.vmem [shape: f32[16,32], index: 0, kind: input, shape index: {}]   ;;  %s363_s1 = inlined_call_operand.vmem [shape: f32[32,8], index: 1, kind: input, shape index: {}]   ;;  %s364_s2 = inlined_call_operand.vmem [shape: f32[1,8], index: 2, kind: input, shape index: {}]   ;;  %s365_s3 = inlined_call_operand.hbm [shape: f32[2,16], index: 3, kind: output, shape index: {0}]   ;;  %s366_s4 = inlined_call_operand.hbm [shape: s32[2,16], index: 4, kind: output, shape index: {1}]  }
   0x1   :  { %v23_v0 = vld [vmem:[%s363_s1 + $0x18] sm:$0xff]  ;;  %v22_v1 = vld [vmem:[%s363_s1 + $0x10] sm:$0xff]  ;;  %v18_v2 = vld [vmem:[%s362_s0] sm:$0xff] }
   0x2   :  { %238 = vmatprep.subr.mxu0 %v23_v0  ;;  %v21_v3 = vld [vmem:[%s363_s1 + $0x8] sm:$0xff]  ;;  %246 = vmatprep.mubr.msk.f32.mxu0 %vm31_vm0, %v18_v2 }
   0x3   :  { %239 = vmatpush3.msra.mxu0 %v23_v0 }
   0x4   :  { %11 = vsyncpa [#allocation5], 0  ;;  %240 = vmatprep.subr.mxu0 %v22_v1  ;;  %v20_v4 = vld [vmem:[%s363_s1] sm:$0xff]  ;;  %v19_v5 = vld [vmem:[%s362_s0 + $0x8] sm:$0xff]  ;;  %vm153_vm1 = vcmask 130048   ;;  %v151_v20 = vlaneseq  ;;  %s300_s0 = smov [#allocation2]  }
   0x5   :  { %241 = vmatpush3.msra.mxu0 %v22_v1  ;;  %v228_v7 = vld [vmem:[%s364_s2] ss:$0 sm:$0xff]  ;;  %s206_s1 = sshll.u32 %s300_s0, 4  ;;  %vm194_vm7 = vcmask 1040384   ;;  %vm196_vm8 = vcmask 123904   ;;  %s207_s1 = int_to_ptr.vmem [resolvable:$true] %s206_s1 }
   0x6   :  { %242 = vmatprep.subr.mxu0 %v21_v3  ;;  %v152_v23 = vshrl.u32 %v151_v20, 7  ;;  %s256_s2 = scalar_lea.vmem %s207_s1, 32  ;;  %p261_p1 = scmp.lt.s32.totalorder %s207_s1, %s207_s1 }
   0x7   :  { %243 = vmatpush3.msra.mxu0 %v21_v3  ;;  %p257_p0 = scmp.ne.s32.totalorder %s207_s1, %s256_s2  ;;  %p262_p2 = scmp.lt.s32.totalorder %s256_s2, %s256_s2 }
   0x8   :  { %244 = vmatprep.subr.mxu0 %v20_v4 }
   0x9   :  { %245 = vmatpush3.msra.mxu0 %v20_v4  ;;  %p263_p3 = por %p262_p2, %p261_p1 }
   0xa   :  { %247 = vmatmul.mubr.msk.f32.vlgmr.msra.gmra.mxu0 %vm31_vm0, %v19_v5 }
   0xb   :  { %p264_p4 = pnand %p263_p3, %p257_p0 }
  0xca   :  { %v248_v6 = vpop.f32.mrf.mxu0 }
  0xcb   :  { %v110_v10 = vadd.f32 %v248_v6, %v228_v7 }
  0xcc   :  { %v104_v8 = vpop.f32.mrf.mxu0 }
  0xcd   :  { %v105_v9 = vadd.f32 %v228_v7, %v104_v8 }
  0xcf   :  { %113 = vxpose.xlu0.b32.start [1/2] (short) (narrow) %v105_v9, 8 }
  0xd3   :  { %114 = vxpose.xlu0.b32.end [2/2] (short) (narrow) %v110_v10, 8 }
 0x14b   :  { %v129_v11 = vpop.trf.xlu0 }
 0x14c   :  { %v231_v12 = vmul.f32 -1.442695, %v129_v11 }
 0x14e   :  { %252 = vpow2.f32 %v231_v12 }
 0x15b   :  { %v253_v13 = vpop.eup %252 }
 0x15c   :  { %v148_v14 = vadd.f32 1.0, %v253_v13 }
 0x15e   :  { %254 = vrcp.f32 %v148_v14 }
 0x16b   :  { %v255_v15 = vpop.eup %254 }
 0x16c   :  { %v154_v16 = vsel %vm153_vm1, %v255_v15, -inf }
 0x16d   :  { %v155_v17 = vrot.slane %v154_v16, 4 }
 0x16f   :  { %v156_v18 = vmax.f32 %v154_v16, %v155_v17 }
 0x171   :  { %v157_v19 = vrot.slane %v156_v18, 2 }
 0x173   :  { %v158_v21 = vmax.f32 %v156_v18, %v157_v19 }
 0x175   :  { %v159_v22 = vrot.slane %v158_v21, 1 }
 0x177   :  { %v160_v24 = vmax.f32 %v158_v21, %v159_v22 }
 0x179   :  { %vm161_vm2 = vcmp.eq.f32.partialorder %v255_v15, %v160_v24 }
 0x17a   :  { %v162_v25 = vsel %vm161_vm2, %v152_v23, 8 }
 0x17b   :  { %v163_v26 = vsel %vm153_vm1, %v162_v25, 2147483647 }
 0x17c   :  { %v164_v27 = vrot.slane %v163_v26, 4 }
 0x17e   :  { %vm165_vm3 = vcmp.lt.s32.totalorder %v163_v26, %v164_v27 }
 0x17f   :  { %v166_v28 = vsel %vm165_vm3, %v163_v26, %v164_v27 }
 0x180   :  { %v167_v29 = vrot.slane %v166_v28, 2 }
 0x182   :  { %vm168_vm4 = vcmp.lt.s32.totalorder %v166_v28, %v167_v29 }
 0x183   :  { %v169_v30 = vsel %vm168_vm4, %v166_v28, %v167_v29 }
 0x184   :  { %v170_v31 = vrot.slane %v169_v30, 1 }
 0x186   :  { %vm171_vm5 = vcmp.lt.s32.totalorder %v169_v30, %v170_v31 }
 0x187   :  { %v172_v32 = vsel %vm171_vm5, %v169_v30, %v170_v31 }
 0x188   :  { %vm173_vm6 = vcmp.eq.s32.totalorder %v152_v23, %v172_v32 }
 0x189   :  { %v174_v33 = vsel %vm173_vm6, -inf, %v255_v15 }
 0x18a   :  { %v175_v34 = vsel %vm153_vm1, %v174_v33, -inf }
 0x18b   :  { %v176_v35 = vrot.slane %v175_v34, 4 }
 0x18d   :  { %v177_v36 = vmax.f32 %v175_v34, %v176_v35 }
 0x18f   :  { %v178_v37 = vrot.slane %v177_v36, 2 }
 0x191   :  { %v179_v38 = vmax.f32 %v177_v36, %v178_v37 }
 0x193   :  { %v180_v39 = vrot.slane %v179_v38, 1 }
 0x195   :  { %v181_v40 = vmax.f32 %v179_v38, %v180_v39 }
 0x197   :  { %vm182_vm9 = vcmp.eq.f32.partialorder %v174_v33, %v181_v40  ;;  %v195_v41 = vsel %vm194_vm7, %v160_v24, %v181_v40 }
 0x198   :  { %v183_v42 = vsel %vm182_vm9, %v152_v23, 8  ;;  %197 = vst.msk [vmem:[#allocation2] sm:$0x3] %vm196_vm8, %v195_v41 }
 0x199   :  { %v184_v43 = vsel %vm153_vm1, %v183_v42, 2147483647 }
 0x19a   :  { %267 = shalt.err (!%p264_p4)
}
 0x19b   :  { %209 = dma.vmem_to_hbm [thread:$0]  %s207_s1, 32, %s365_s3, [#allocation3]   ;;  %v185_v44 = vrot.slane %v184_v43, 4 }
 0x19c   :  { %s301_s5 = smov [#allocation4]  }
 0x19d   :  { %vm186_vm10 = vcmp.lt.s32.totalorder %v184_v43, %v185_v44  ;;  %s216_s6 = sshll.u32 %s301_s5, 4  ;;  %s217_s6 = int_to_ptr.vmem [resolvable:$true] %s216_s6 }
 0x19e   :  { %v187_v45 = vsel %vm186_vm10, %v184_v43, %v185_v44  ;;  %s276_s7 = scalar_lea.vmem %s217_s6, 32  ;;  %p281_p6 = scmp.lt.s32.totalorder %s217_s6, %s217_s6 }
 0x19f   :  { %v188_v46 = vrot.slane %v187_v45, 2  ;;  %p277_p5 = scmp.ne.s32.totalorder %s217_s6, %s276_s7  ;;  %p282_p7 = scmp.lt.s32.totalorder %s276_s7, %s276_s7 }
 0x1a1   :  { %vm189_vm11 = vcmp.lt.s32.totalorder %v187_v45, %v188_v46  ;;  %p283_p8 = por %p282_p7, %p281_p6 }
 0x1a2   :  { %v190_v47 = vsel %vm189_vm11, %v187_v45, %v188_v46 }
 0x1a3   :  { %v191_v48 = vrot.slane %v190_v47, 1  ;;  %p284_p9 = pnand %p283_p8, %p277_p5 }
 0x1a5   :  { %vm192_vm12 = vcmp.lt.s32.totalorder %v190_v47, %v191_v48 }
 0x1a6   :  { %v193_v49 = vsel %vm192_vm12, %v190_v47, %v191_v48 }
 0x1a7   :  { %v198_v50 = vsel %vm194_vm7, %v172_v32, %v193_v49 }
 0x1a8   :  { %199 = vst.msk [vmem:[#allocation4] sm:$0x3] %vm196_vm8, %v198_v50 }
 0x1a9   :  { %287 = shalt.err (!%p284_p9)
}
 0x1aa   :  { %219 = dma.vmem_to_hbm [thread:$0]  %s217_s6, 32, %s366_s4, [#allocation5]  }
 0x1ab   :  { %296 = dma.done.wait [#allocation3], 32  }
 0x1ac   :  { %297 = vsyncadd [#allocation3], 4294967264 }
 0x1ad   :  { %298 = dma.done.wait [#allocation5], 32  }
 0x1ae   :  { %299 = vsyncadd [#allocation5], 4294967264 }
 0x1af   :  { %226 = vsyncpa [#allocation3], 1 }
 0x1b0   :  { %227 = vsyncpa [#allocation5], 1 }

</bundles_post_ra>
